<compile_context>
chip_gen: v5e
topology: v5e:2x2
jax: 0.10.0
libtpu: 0.0.40
codegen_flags: <defaults>
</compile_context>

<pallas_src>
import jax
import jax.numpy as jnp
from jax.experimental import pallas as pl
from jax.experimental.pallas import tpu as pltpu


def _round_up(x, m):
    return ((x + m - 1) // m) * m


def _mean_kernel(x_ref, wt_ref, b_ref, mean_ref):
    # x_ref:    (TB, K)   batch tile of inputs
    # wt_ref:   (K, Np)   pre-transposed, lane-padded weights (resident)
    # b_ref:    (1, Np)   lane-padded bias (resident)
    # mean_ref: (TB, Np)  lane-dense output tile
    acc = jnp.dot(x_ref[...], wt_ref[...], preferred_element_type=jnp.float32)
    mean_ref[...] = (acc + b_ref[...]).astype(mean_ref.dtype)


def diag_gaussian_forward(x, w, b, logstd, *, block_batch=512):
    """DiagGaussian forward.

    Returns (mean, std), the parameters of the policy Normal:
      mean: (batch, num_outputs) = x @ W.T + b
      std:  (1, num_outputs)     = exp(logstd)   (constant over batch,
                                                  broadcastable downstream)
    """
    batch, num_inputs = x.shape
    num_outputs = w.shape[0]

    # --- wrapper-side layout plumbing (not compute hoisting) --------------
    # Lane-dense output dim (multiple of 128); PyTorch-layout W -> [K, Np].
    n_pad = _round_up(num_outputs, 128)
    wt = jnp.zeros((num_inputs, n_pad), w.dtype).at[:, :num_outputs].set(w.T)
    b_p = jnp.zeros((1, n_pad), jnp.float32).at[:, :num_outputs].set(
        b.reshape(1, num_outputs).astype(jnp.float32))

    # Batch tiling: pad batch up to a multiple of the tile so all blocks are
    # full (keeps the (8,128) block rule trivially satisfied).
    tb = min(block_batch, _round_up(batch, 8))
    b_pad = _round_up(batch, tb)
    if b_pad != batch:
        x = jnp.pad(x, ((0, b_pad - batch), (0, 0)))

    grid = (b_pad // tb,)
    itemsize = jnp.dtype(x.dtype).itemsize
    cost = pl.CostEstimate(
        flops=2 * b_pad * num_inputs * n_pad,
        transcendentals=0,
        bytes_accessed=itemsize * (b_pad * num_inputs          # x
                                   + num_inputs * n_pad        # W^T
                                   + n_pad                     # bias
                                   + b_pad * n_pad),           # mean out
    )

    mean_padded = pl.pallas_call(
        _mean_kernel,
        out_shape=jax.ShapeDtypeStruct((b_pad, n_pad), jnp.float32),
        grid=grid,
        in_specs=[
            pl.BlockSpec((tb, num_inputs), lambda i: (i, 0)),      # x batch tile
            pl.BlockSpec((num_inputs, n_pad), lambda i: (0, 0)),   # W^T (resident)
            pl.BlockSpec((1, n_pad), lambda i: (0, 0)),            # bias (resident)
        ],
        out_specs=pl.BlockSpec((tb, n_pad), lambda i: (i, 0)),
        compiler_params=pltpu.CompilerParams(
            dimension_semantics=("parallel",)),
        cost_estimate=cost,
    )(x, wt, b_p)

    mean = mean_padded[:batch, :num_outputs]
    # std is constant across the batch: exp(logstd) once, outside the kernel.
    std = jnp.exp(logstd.reshape(1, num_outputs).astype(jnp.float32))
    return mean, std


def _orthogonal_init(key, rows, cols, gain=1.0):
    """Deterministic orthogonal init (matches nn.init.orthogonal_ semantics)."""
    flat = jax.random.normal(key, (max(rows, cols), min(rows, cols)), jnp.float32)
    q, r = jnp.linalg.qr(flat)
    d = jnp.sign(jnp.diag(r))          # sign correction for uniqueness
    q = q * d[None, :]
    if rows < cols:
        q = q.T
    return gain * q[:rows, :cols]


if __name__ == "__main__":
    key = jax.random.PRNGKey(0)
    k_x, k_w = jax.random.split(key)

    batch = 8
    num_inputs = 32
    num_outputs = 8

    # Parameters matching DiagGaussian.__init__:
    #   fc_mean: orthogonal weight (gain=1), zero bias; logstd: zeros (AddBias).
    w = _orthogonal_init(k_w, num_outputs, num_inputs, gain=1.0)   # (out, in)
    b = jnp.zeros((num_outputs,), jnp.float32)
    logstd = jnp.zeros((num_outputs,), jnp.float32)

    x = jax.random.normal(k_x, (batch, num_inputs), jnp.float32)

    mean, std = diag_gaussian_forward(x, w, b, logstd)
    jax.block_until_ready((mean, std))

    # Correctness vs. plain-JAX reference of the PyTorch forward.
    mean_ref = x @ w.T + b[None, :]
    std_ref = jnp.exp(jnp.broadcast_to(logstd[None, :], (batch, num_outputs)))
    assert mean.shape == (batch, num_outputs)
    assert jnp.allclose(mean, mean_ref, atol=1e-5), "mean mismatch"
    assert jnp.allclose(jnp.broadcast_to(std, (batch, num_outputs)), std_ref,
                        atol=1e-6), "std mismatch"

    # TODO(synk): the torch.distributions.Normal wrapper itself has no Pallas
    # equivalent; the kernel returns its (mean, std) parameters instead.
    print("KERNEL_OK")
</pallas_src>

<mosaic_0001>
module attributes {stable_mosaic.version = 11 : i64} {
  func.func @_mean_kernel(%arg0: i32, %arg1: memref<8x32xf32, #tpu.memory_space<vmem>>, %arg2: memref<32x128xf32, #tpu.memory_space<vmem>>, %arg3: memref<1x128xf32, #tpu.memory_space<vmem>>, %arg4: memref<8x128xf32, #tpu.memory_space<vmem>>) attributes {dimension_semantics = [#tpu.dimension_semantics<parallel>], iteration_bounds = array<i64: 1>, scalar_prefetch = 0 : i64, scratch_operands = 0 : i64, tpu.core_type = #tpu.core_type<tc>, window_params = [{transform_indices = @transform_0, window_bounds = array<i64: 8, 32>}, {pipeline_mode = #tpu.pipeline_mode<synchronous>, transform_indices = @transform_1, window_bounds = array<i64: 32, 128>}, {pipeline_mode = #tpu.pipeline_mode<synchronous>, transform_indices = @transform_2, window_bounds = array<i64: 1, 128>}, {transform_indices = @transform_3, window_bounds = array<i64: 8, 128>}]} {
    %c0 = arith.constant 0 : index
    %c0_0 = arith.constant 0 : index
    %0 = vector.load %arg1[%c0, %c0_0] : memref<8x32xf32, #tpu.memory_space<vmem>>, vector<8x32xf32>
    %c0_1 = arith.constant 0 : index
    %c0_2 = arith.constant 0 : index
    %1 = vector.load %arg2[%c0_1, %c0_2] : memref<32x128xf32, #tpu.memory_space<vmem>>, vector<32x128xf32>
    %cst = arith.constant dense<0.000000e+00> : vector<8x128xf32>
    %2 = tpu.matmul %0, %1, %cst {dimension_numbers = #tpu.dot_dimension_numbers<[1], [0], [0], [1], [0, 0, 1, 1], [], []>} : vector<8x32xf32>, vector<32x128xf32>, vector<8x128xf32> -> vector<8x128xf32>
    %c0_3 = arith.constant 0 : index
    %c0_4 = arith.constant 0 : index
    %3 = vector.load %arg3[%c0_3, %c0_4] : memref<1x128xf32, #tpu.memory_space<vmem>>, vector<1x128xf32>
    %4 = vector.broadcast %3 : vector<1x128xf32> to vector<8x128xf32>
    %5 = arith.addf %2, %4 : vector<8x128xf32>
    %c0_5 = arith.constant 0 : index
    %c0_6 = arith.constant 0 : index
    %6 = vector.load %arg4[%c0_5, %c0_6] : memref<8x128xf32, #tpu.memory_space<vmem>>, vector<8x128xf32>
    tpu.vector_store %arg4[%c0_5, %c0_6], %5 {strides = array<i32>} : memref<8x128xf32, #tpu.memory_space<vmem>>, vector<8x128xf32>,
    return
  }
  func.func @transform_0(%arg0: i32) -> (i32, i32) {
    %c0_i32 = arith.constant 0 : i32
    %c0_i32_0 = arith.constant 0 : i32
    return %arg0, %c0_i32 : i32, i32
  }
  func.func @transform_1(%arg0: i32) -> (i32, i32) {
    %c0_i32 = arith.constant 0 : i32
    %c0_i32_0 = arith.constant 0 : i32
    %c0_i32_1 = arith.constant 0 : i32
    return %c0_i32, %c0_i32_0 : i32, i32
  }
  func.func @transform_2(%arg0: i32) -> (i32, i32) {
    %c0_i32 = arith.constant 0 : i32
    %c0_i32_0 = arith.constant 0 : i32
    %c0_i32_1 = arith.constant 0 : i32
    return %c0_i32, %c0_i32_0 : i32, i32
  }
  func.func @transform_3(%arg0: i32) -> (i32, i32) {
    %c0_i32 = arith.constant 0 : i32
    %c0_i32_0 = arith.constant 0 : i32
    return %arg0, %c0_i32 : i32, i32
  }
}

</mosaic_0001>

<bundles_post_ra>
// kernel: tpu_custom_call.1
= control target key start
LH: loop header
LB: loop body
LE: loop exit
PB: predicated region body
PF: predicated region fallthrough
CT: control target
= control target key end

     0   :  { %8 = vsyncpa [#allocation3], 0  ;;  %s219_s0 = inlined_call_operand.hbm [shape: f32[8,32], index: 0, kind: input, shape index: {}]   ;;  %s220_s1 = inlined_call_operand.hbm [shape: f32[32,128], index: 1, kind: input, shape index: {}]   ;;  %s221_s2 = inlined_call_operand.vmem [shape: f32[1,128], index: 2, kind: input, shape index: {}]   ;;  %s222_s3 = inlined_call_operand.hbm [shape: f32[8,128], index: 3, kind: output, shape index: {}]  }
   0x1   :  { %9 = vsyncpa [#allocation6], 0 }
   0x2   :  { %10 = vsyncpa [#allocation4], 0  ;;  %s16_s14 = sshll.u32 %s219_s0, 4  ;;  %s182_s15 = smov [#allocation2]   ;;  %s17_s14 = int_to_ptr.hbm [resolvable:$true] %s16_s14 }
   0x3   :  { %s18_s16 = sshll.u32 %s182_s15, 4  ;;  %s26_s19 = sshll.u32 %s220_s1, 4  ;;  %s19_s16 = int_to_ptr.vmem [resolvable:$true] %s18_s16  ;;  %s27_s19 = int_to_ptr.hbm [resolvable:$true] %s26_s19 }
   0x4   :  { %21 = dma.hbm_to_vmem [thread:$0]  %s17_s14, 128, %s19_s16, [#allocation3]  }
   0x5   :  { %s183_s20 = smov [#allocation5]   ;;  %s184_s22 = smov 128  }
   0x6   :  { %s28_s21 = sshll.u32 %s183_s20, 4  ;;  %s185_s23 = smov 8   ;;  %s29_s21 = int_to_ptr.vmem [resolvable:$true] %s28_s21 }
   0x7   :  { %34 = dma.hbm_to_vmem [thread:$0]  %s27_s19, 512, %s29_s21, [#allocation6], %s184_s22, %s184_s22, %s185_s23  }
   0x8   :  { %176 = dma.done.wait [#allocation3], 128  }
   0x9   :  { %177 = vsyncadd [#allocation3], 4294967168 }
   0xa   :  { %178 = dma.done.wait [#allocation6], 512  }
   0xb   :  { %179 = vsyncadd [#allocation6], 4294966784  ;;  %v49_v0 = vld [vmem:[#allocation5 + $0x18] sm:$0xff]  ;;  %v48_v1 = vld [vmem:[#allocation5 + $0x10] sm:$0xff]  ;;  %vm54_vm0 = vcmask 261120   ;;  %s186_s24 = smov [#allocation7]  }
   0xc   :  { %70 = vmatpush.msra.mxu0 %v49_v0  ;;  %v47_v2 = vld [vmem:[#allocation5 + $0x8] sm:$0xff]  ;;  %v46_v3 = vld [vmem:[#allocation5] sm:$0xff]  ;;  %v45_v4 = vld [vmem:[#allocation2] sm:$0xff]  ;;  %s84_s25 = sshll.u32 %s186_s24, 4  ;;  %s86_s28 = sshll.u32 %s222_s3, 4  ;;  %s85_s25 = int_to_ptr.vmem [resolvable:$true] %s84_s25  ;;  %s87_s28 = int_to_ptr.hbm [resolvable:$true] %s86_s28 }
   0xd   :  { %v103_v5 = vld [vmem:[%s221_s2] ss:$0 sm:$0xff] }
   0xe   :  { %71 = vmatpush.msra.mxu0 %v48_v1 }
  0x10   :  { %72 = vmatpush.msra.mxu0 %v47_v2 }
  0x12   :  { %73 = vmatpush.msra.mxu0 %v46_v3 }
  0x13   :  { %97 = vmatmul.msk.f32.vlgmr.msra.gmra.mxu0 %vm54_vm0, %v45_v4 }
  0x90   :  { %v75_v6 = vpop.f32.mrf.mxu0 }
  0x91   :  { %v76_v7 = vadd.f32 %v103_v5, %v75_v6 }
  0x93   :  { %78 = vst [vmem:[#allocation7] sm:$0xff] %v76_v7 }
  0x94   :  { %89 = dma.vmem_to_hbm [thread:$0]  %s85_s25, 128, %s87_s28, [#allocation4]  }
  0x95   :  { %180 = dma.done.wait [#allocation4], 128  }
  0x96   :  { %181 = vsyncadd [#allocation4], 4294967168 }
  0x97   :  { %94 = vsyncpa [#allocation3], 1 }
  0x98   :  { %95 = vsyncpa [#allocation6], 1 }
  0x99   :  { %96 = vsyncpa [#allocation4], 1 }

</bundles_post_ra>
